<compile_context>
chip_gen: v6e
topology: v6e:2x2x1
jax: 0.10.0
libtpu: 0.0.40
codegen_flags: <defaults>
</compile_context>

<pallas_src>
import functools
import math

import jax
import jax.numpy as jnp
from jax import lax
from jax.experimental import pallas as pl
from jax.experimental.pallas import tpu as pltpu

NEG_MASK = -90000000000.0


# ---------------------------------------------------------------------------
# Pass 1: projection + attention logits (runs once per layer, row-tiled)
# ---------------------------------------------------------------------------
def gat_proj_kernel(h_ref, w_ref, asrc_ref, adstT_ref,
                    whbf_ref, fsrc_ref, fdstT_ref):
    """h_ref    : (TILE_R, F_in)       node features (f32 or bf16)
       w_ref    : (F_in, H*F_out)      all heads' projections, head-major cols
       asrc_ref : (H*F_out, H)         block-diagonal alpha (source halves)
       adstT_ref: (H, H*F_out)         block-diagonal alpha (dest halves), transposed
       whbf_ref : (TILE_R, H*F_out)    bf16 projected features (for aggregation)
       fsrc_ref : (TILE_R, H)          f32 per-head source logits
       fdstT_ref: (H, TILE_R)          f32 per-head destination logits, lane-dense
    """
    h = h_ref[...].astype(jnp.float32)
    wh = jnp.dot(h, w_ref[...], preferred_element_type=jnp.float32)
    whbf_ref[...] = wh.astype(jnp.bfloat16)
    # Two wide MXU pushes instead of 2*H one-lane dots.
    fsrc_ref[...] = jnp.dot(wh, asrc_ref[...],
                            preferred_element_type=jnp.float32)
    fdstT_ref[...] = lax.dot_general(
        adstT_ref[...], wh, (((1,), (1,)), ((), ())),
        preferred_element_type=jnp.float32)


# ---------------------------------------------------------------------------
# Pass 2: masked softmax over the neighbourhood + aggregation + ELU
# ---------------------------------------------------------------------------
def gat_attn_kernel(fsrc_ref, fdstT_ref, bias_ref, wh_ref, out_ref, *,
                    neg_slope, heads, f_out):
    """fsrc_ref : (TILE_R, H)      f32 source logits for this row tile
       fdstT_ref: (H, N)           f32 destination logits (all nodes)
       bias_ref : (TILE_R, N)      bf16 additive mask (0 edge / NEG_MASK non-edge)
       wh_ref   : (N, H*F_out)     bf16 projected features (key/value side)
       out_ref  : (TILE_R, H*F_out) lane-dense, head-concatenated output (ELU'd)
    """
    fsrc = fsrc_ref[...]                              # (T, H)  f32
    fdstT = fdstT_ref[...]                            # (H, N)  f32
    bias = bias_ref[...].astype(jnp.float32)          # (T, N)  hoisted out of loop
    wh = wh_ref[...]                                  # (N, H*F) bf16

    for hd in range(heads):                           # static unroll (H small)
        sl = slice(hd * f_out, (hd + 1) * f_out)
        # e[i, j] = LeakyReLU( Wh[i].alpha_src + Wh[j].alpha_dst )
        e = fsrc[:, hd:hd + 1] + fdstT[hd:hd + 1, :]  # (T, N)
        e = jnp.where(e > 0, e, neg_slope * e)        # LeakyReLU
        masked = e + bias                             # additive neighbourhood mask
        m = jnp.max(masked, axis=1, keepdims=True)
        p = jnp.exp(masked - m)
        s = jnp.sum(p, axis=1, keepdims=True)
        attn = p * pl.reciprocal(s, approx=True)      # EUP slot

        out_h = jnp.dot(attn.astype(jnp.bfloat16), wh[:, sl],
                        preferred_element_type=jnp.float32)   # (T, F)
        out_h = jnp.where(out_h > 0, out_h, jnp.expm1(out_h))  # ELU
        out_ref[:, sl] = out_h.astype(out_ref.dtype)


# ---------------------------------------------------------------------------
# One multi-head GraphAttnLayer (+ELU) == two pallas_calls
# ---------------------------------------------------------------------------
def gat_layer(h, bias, w_all, a_src_blk, a_dst_blk, *, heads, f_out,
              neg_slope, out_dtype):
    n, f_in = h.shape
    hf = heads * f_out
    assert w_all.shape == (f_in, hf)
    assert a_src_blk.shape == (hf, heads)
    assert a_dst_blk.shape == (hf, heads)
    assert bias.shape == (n, n)

    # Row tiling: one full-size tile at demo/small sizes (no per-step
    # pipeline overhead, nothing duplicated); 256-row tiles (>=128 rows per
    # TensorCore on v7x) once the graph is large enough to need it.
    if n > 256 and n % 256 == 0:
        tile_r = 256
    else:
        tile_r = n
    num_tiles = n // tile_r

    a_dst_blkT = a_dst_blk.T                          # (H, H*F_out)

    # ---- Pass 1: projection + logits (hoisted; runs once over the rows) ----
    proj_cost = pl.CostEstimate(
        flops=int(2 * n * f_in * hf + 4 * n * hf * heads),
        transcendentals=0,
        bytes_accessed=int(4 * (n * f_in + f_in * hf + 2 * hf * heads
                                + 2 * n * heads) + 2 * n * hf))
    wh_bf, f_src, f_dstT = pl.pallas_call(
        gat_proj_kernel,
        out_shape=(jax.ShapeDtypeStruct((n, hf), jnp.bfloat16),
                   jax.ShapeDtypeStruct((n, heads), jnp.float32),
                   jax.ShapeDtypeStruct((heads, n), jnp.float32)),
        grid_spec=pltpu.PrefetchScalarGridSpec(
            num_scalar_prefetch=0,
            grid=(num_tiles,),
            in_specs=[
                pl.BlockSpec((tile_r, f_in), lambda i: (i, 0)),   # h row tile
                pl.BlockSpec((f_in, hf), lambda i: (0, 0)),       # W_all
                pl.BlockSpec((hf, heads), lambda i: (0, 0)),      # alpha src (blk diag)
                pl.BlockSpec((heads, hf), lambda i: (0, 0)),      # alpha dst^T (blk diag)
            ],
            out_specs=(
                pl.BlockSpec((tile_r, hf), lambda i: (i, 0)),     # wh (bf16)
                pl.BlockSpec((tile_r, heads), lambda i: (i, 0)),  # f_src
                pl.BlockSpec((heads, tile_r), lambda i: (0, i)),  # f_dst^T
            ),
        ),
        compiler_params=pltpu.CompilerParams(
            dimension_semantics=("parallel",)),
        cost_estimate=proj_cost,
    )(h, w_all, a_src_blk, a_dst_blkT)

    # ---- Pass 2: masked softmax + aggregation + ELU, row-tiled ----
    out_itemsize = jnp.dtype(out_dtype).itemsize
    step_bytes = (tile_r * heads * 4 + heads * n * 4 + tile_r * n * 2
                  + n * hf * 2 + tile_r * hf * out_itemsize)
    vmem_limit = int(min(100 * 2**20, max(16 * 2**20, 8 * step_bytes)))

    attn_cost = pl.CostEstimate(
        flops=int(2 * n * n * hf + 8 * n * n * heads),
        transcendentals=int(n * n * heads + n * heads),
        bytes_accessed=int(8 * n * heads + 2 * n * n + 2 * n * hf
                           + out_itemsize * n * hf))

    kernel = functools.partial(gat_attn_kernel, neg_slope=neg_slope,
                               heads=heads, f_out=f_out)
    out = pl.pallas_call(
        kernel,
        out_shape=jax.ShapeDtypeStruct((n, hf), out_dtype),
        grid_spec=pltpu.PrefetchScalarGridSpec(
            num_scalar_prefetch=0,
            grid=(num_tiles,),
            in_specs=[
                pl.BlockSpec((tile_r, heads), lambda i: (i, 0)),  # f_src rows
                pl.BlockSpec((heads, n), lambda i: (0, 0)),       # f_dst^T (all)
                pl.BlockSpec((tile_r, n), lambda i: (i, 0)),      # bias rows (bf16)
                pl.BlockSpec((n, hf), lambda i: (0, 0)),          # wh (bf16, k/v)
            ],
            out_specs=pl.BlockSpec((tile_r, hf), lambda i: (i, 0)),
        ),
        compiler_params=pltpu.CompilerParams(
            dimension_semantics=("parallel",),
            vmem_limit_bytes=vmem_limit),
        cost_estimate=attn_cost,
    )(f_src, f_dstT, bias, wh_bf)
    return out


def gat_forward(x, adjacency, params, neg_slope):
    """Full GAT forward: multi-head layer 1 (concat) -> single-head layer 2."""
    # Additive neighbourhood mask, computed once and shared by both layers
    # (bf16 halves the dominant (N, N) HBM stream).
    bias = jnp.where(adjacency > 0, 0.0, NEG_MASK).astype(jnp.bfloat16)

    h1 = gat_layer(x, bias, params["w1_all"], params["a1_src_blk"],
                   params["a1_dst_blk"], heads=params["num_heads"],
                   f_out=params["f_hidden"], neg_slope=neg_slope,
                   out_dtype=jnp.bfloat16)            # lane-dense bf16 handoff
    out = gat_layer(h1, bias, params["w2"], params["a2_src_blk"],
                    params["a2_dst_blk"], heads=1,
                    f_out=params["num_classes"], neg_slope=neg_slope,
                    out_dtype=jnp.float32)
    return out


# ---------------------------------------------------------------------------
# Pure-JAX f32 reference (matches the PyTorch module; dropout == identity)
# ---------------------------------------------------------------------------
def gat_reference(x, adj, params, neg_slope):
    def layer(h, w_all, a_src_blk, a_dst_blk, heads, f_out):
        wh = h @ w_all
        fs = wh @ a_src_blk                           # (N, H)
        fd = wh @ a_dst_blk                           # (N, H)
        outs = []
        for hd in range(heads):
            e = fs[:, hd][:, None] + fd[:, hd][None, :]
            e = jnp.where(e > 0, e, neg_slope * e)
            masked = jnp.where(adj > 0, e, NEG_MASK)
            attn = jax.nn.softmax(masked, axis=1)
            outs.append(jax.nn.elu(attn @ wh[:, hd * f_out:(hd + 1) * f_out]))
        return jnp.concatenate(outs, axis=1)

    h1 = layer(x, params["w1_all"], params["a1_src_blk"], params["a1_dst_blk"],
               params["num_heads"], params["f_hidden"])
    return layer(h1, params["w2"], params["a2_src_blk"], params["a2_dst_blk"],
                 1, params["num_classes"])


def init_params(key, num_input_features, num_hidden_per_head, num_heads,
                num_classes):
    """Deterministic init matching GraphAttnLayer.reset_parameters(), packed
    into the fused-head / block-diagonal-alpha layout used by the kernels."""
    k1, k2, k3, k4 = jax.random.split(key, 4)
    fh = num_hidden_per_head
    hf = num_heads * fh

    w1_stdv = 1.0 / math.sqrt(fh)
    alpha_stdv = 1.0  # 1/sqrt(alpha.size(1)) == 1/sqrt(1)
    w1 = jax.random.uniform(k1, (num_heads, num_input_features, fh),
                            minval=-w1_stdv, maxval=w1_stdv, dtype=jnp.float32)
    alpha1 = jax.random.uniform(k2, (num_heads, 2 * fh, 1),
                                minval=-alpha_stdv, maxval=alpha_stdv,
                                dtype=jnp.float32)

    w2_stdv = 1.0 / math.sqrt(num_classes)
    w2 = jax.random.uniform(k3, (hf, num_classes),
                            minval=-w2_stdv, maxval=w2_stdv, dtype=jnp.float32)
    alpha2 = jax.random.uniform(k4, (2 * num_classes, 1),
                                minval=-alpha_stdv, maxval=alpha_stdv,
                                dtype=jnp.float32)

    # W_all[:, h*F:(h+1)*F] == W[head h]  (matches torch.cat([...], dim=1)).
    w1_all = jnp.transpose(w1, (1, 0, 2)).reshape(num_input_features, hf)

    # Block-diagonal alpha operands: one wide MXU push per side instead of
    # 2*H one-lane dots inside the kernel.
    a1_src_blk = jnp.zeros((hf, num_heads), jnp.float32)
    a1_dst_blk = jnp.zeros((hf, num_heads), jnp.float32)
    for hd in range(num_heads):
        a1_src_blk = a1_src_blk.at[hd * fh:(hd + 1) * fh, hd].set(
            alpha1[hd, :fh, 0])
        a1_dst_blk = a1_dst_blk.at[hd * fh:(hd + 1) * fh, hd].set(
            alpha1[hd, fh:, 0])

    a2_src_blk = alpha2[:num_classes]                 # (C, 1)
    a2_dst_blk = alpha2[num_classes:]                 # (C, 1)

    return {"w1_all": w1_all, "a1_src_blk": a1_src_blk, "a1_dst_blk": a1_dst_blk,
            "w2": w2, "a2_src_blk": a2_src_blk, "a2_dst_blk": a2_dst_blk,
            "num_heads": num_heads, "f_hidden": fh, "num_classes": num_classes}


if __name__ == "__main__":
    # Small, deterministic problem.
    N = 16
    NUM_INPUT_FEATURES = 32
    NUM_HIDDEN_PER_HEAD = 16
    NUM_HEADS = 4
    NUM_CLASSES = 8
    RELU_NEG_SLOPE = 0.2

    key = jax.random.PRNGKey(0)
    k_x, k_adj, k_params = jax.random.split(key, 3)

    x = jax.random.normal(k_x, (N, NUM_INPUT_FEATURES), dtype=jnp.float32)

    # Random adjacency with self loops, densified (the torch sparse adjacency
    # is only ever used via `adjacency > 0`).
    adj_rand = (jax.random.uniform(k_adj, (N, N)) < 0.3).astype(jnp.float32)
    adjacency = jnp.clip(adj_rand + jnp.eye(N, dtype=jnp.float32), 0.0, 1.0)

    params = init_params(k_params, NUM_INPUT_FEATURES, NUM_HIDDEN_PER_HEAD,
                         NUM_HEADS, NUM_CLASSES)

    out = gat_forward(x, adjacency, params, RELU_NEG_SLOPE)
    out = jax.block_until_ready(out)

    assert out.shape == (N, NUM_CLASSES), out.shape
    assert bool(jnp.all(jnp.isfinite(out)))

    # Check vs. a pure-JAX f32 reference.  The kernel keeps the attention
    # logits in f32 but uses bf16 MXU operands for the aggregation, a bf16
    # inter-layer handoff and an approximate reciprocal -> loose tolerance.
    ref = jax.block_until_ready(gat_reference(x, adjacency, params,
                                              RELU_NEG_SLOPE))
    max_abs_diff = float(jnp.max(jnp.abs(out - ref)))
    assert max_abs_diff < 0.2, f"kernel/reference mismatch: {max_abs_diff}"

    print("KERNEL_OK")
</pallas_src>

<mosaic_0001>
module attributes {stable_mosaic.version = 11 : i64} {
  func.func @gat_proj_kernel(%arg0: i32, %arg1: memref<16x32xf32, #tpu.memory_space<vmem>>, %arg2: memref<32x64xf32, #tpu.memory_space<vmem>>, %arg3: memref<64x4xf32, #tpu.memory_space<vmem>>, %arg4: memref<4x64xf32, #tpu.memory_space<vmem>>, %arg5: memref<16x64xbf16, #tpu.memory_space<vmem>>, %arg6: memref<16x4xf32, #tpu.memory_space<vmem>>, %arg7: memref<4x16xf32, #tpu.memory_space<vmem>>) attributes {dimension_semantics = [#tpu.dimension_semantics<parallel>], iteration_bounds = array<i64: 1>, scalar_prefetch = 0 : i64, scratch_operands = 0 : i64, tpu.core_type = #tpu.core_type<tc>, window_params = [{transform_indices = @transform_0, window_bounds = array<i64: 16, 32>}, {pipeline_mode = #tpu.pipeline_mode<synchronous>, transform_indices = @transform_1, window_bounds = array<i64: 32, 64>}, {pipeline_mode = #tpu.pipeline_mode<synchronous>, transform_indices = @transform_2, window_bounds = array<i64: 64, 4>}, {pipeline_mode = #tpu.pipeline_mode<synchronous>, transform_indices = @transform_3, window_bounds = array<i64: 4, 64>}, {transform_indices = @transform_4, window_bounds = array<i64: 16, 64>}, {transform_indices = @transform_5, window_bounds = array<i64: 16, 4>}, {transform_indices = @transform_6, window_bounds = array<i64: 4, 16>}]} {
    %c0 = arith.constant 0 : index
    %c0_0 = arith.constant 0 : index
    %0 = vector.load %arg1[%c0, %c0_0] : memref<16x32xf32, #tpu.memory_space<vmem>>, vector<16x32xf32>
    %c0_1 = arith.constant 0 : index
    %c0_2 = arith.constant 0 : index
    %1 = vector.load %arg2[%c0_1, %c0_2] : memref<32x64xf32, #tpu.memory_space<vmem>>, vector<32x64xf32>
    %cst = arith.constant dense<0.000000e+00> : vector<16x64xf32>
    %2 = tpu.matmul %0, %1, %cst {dimension_numbers = #tpu.dot_dimension_numbers<[1], [0], [0], [1], [0, 0, 1, 1], [], []>} : vector<16x32xf32>, vector<32x64xf32>, vector<16x64xf32> -> vector<16x64xf32>
    %3 = arith.truncf %2 : vector<16x64xf32> to vector<16x64xbf16>
    %c0_3 = arith.constant 0 : index
    %c0_4 = arith.constant 0 : index
    %4 = vector.load %arg5[%c0_3, %c0_4] : memref<16x64xbf16, #tpu.memory_space<vmem>>, vector<16x64xbf16>
    tpu.vector_store %arg5[%c0_3, %c0_4], %3 {strides = array<i32>} : memref<16x64xbf16, #tpu.memory_space<vmem>>, vector<16x64xbf16>,
    %c0_5 = arith.constant 0 : index
    %c0_6 = arith.constant 0 : index
    %5 = vector.load %arg3[%c0_5, %c0_6] : memref<64x4xf32, #tpu.memory_space<vmem>>, vector<64x4xf32>
    %cst_7 = arith.constant dense<0.000000e+00> : vector<16x4xf32>
    %6 = tpu.matmul %2, %5, %cst_7 {dimension_numbers = #tpu.dot_dimension_numbers<[1], [0], [0], [1], [0, 0, 1, 1], [], []>} : vector<16x64xf32>, vector<64x4xf32>, vector<16x4xf32> -> vector<16x4xf32>
    %c0_8 = arith.constant 0 : index
    %c0_9 = arith.constant 0 : index
    %7 = vector.load %arg6[%c0_8, %c0_9] : memref<16x4xf32, #tpu.memory_space<vmem>>, vector<16x4xf32>
    tpu.vector_store %arg6[%c0_8, %c0_9], %6 {strides = array<i32>} : memref<16x4xf32, #tpu.memory_space<vmem>>, vector<16x4xf32>,
    %c0_10 = arith.constant 0 : index
    %c0_11 = arith.constant 0 : index
    %8 = vector.load %arg4[%c0_10, %c0_11] : memref<4x64xf32, #tpu.memory_space<vmem>>, vector<4x64xf32>
    %cst_12 = arith.constant dense<0.000000e+00> : vector<4x16xf32>
    %9 = tpu.matmul %8, %2, %cst_12 {dimension_numbers = #tpu.dot_dimension_numbers<[1], [1], [0], [0], [0, 0, 1, 0], [], []>} : vector<4x64xf32>, vector<16x64xf32>, vector<4x16xf32> -> vector<4x16xf32>
    %c0_13 = arith.constant 0 : index
    %c0_14 = arith.constant 0 : index
    %10 = vector.load %arg7[%c0_13, %c0_14] : memref<4x16xf32, #tpu.memory_space<vmem>>, vector<4x16xf32>
    tpu.vector_store %arg7[%c0_13, %c0_14], %9 {strides = array<i32>} : memref<4x16xf32, #tpu.memory_space<vmem>>, vector<4x16xf32>,
    return
  }
  func.func @transform_0(%arg0: i32) -> (i32, i32) {
    %c0_i32 = arith.constant 0 : i32
    %c0_i32_0 = arith.constant 0 : i32
    return %arg0, %c0_i32 : i32, i32
  }
  func.func @transform_1(%arg0: i32) -> (i32, i32) {
    %c0_i32 = arith.constant 0 : i32
    %c0_i32_0 = arith.constant 0 : i32
    %c0_i32_1 = arith.constant 0 : i32
    return %c0_i32, %c0_i32_0 : i32, i32
  }
  func.func @transform_2(%arg0: i32) -> (i32, i32) {
    %c0_i32 = arith.constant 0 : i32
    %c0_i32_0 = arith.constant 0 : i32
    %c0_i32_1 = arith.constant 0 : i32
    return %c0_i32, %c0_i32_0 : i32, i32
  }
  func.func @transform_3(%arg0: i32) -> (i32, i32) {
    %c0_i32 = arith.constant 0 : i32
    %c0_i32_0 = arith.constant 0 : i32
    %c0_i32_1 = arith.constant 0 : i32
    return %c0_i32, %c0_i32_0 : i32, i32
  }
  func.func @transform_4(%arg0: i32) -> (i32, i32) {
    %c0_i32 = arith.constant 0 : i32
    %c0_i32_0 = arith.constant 0 : i32
    return %arg0, %c0_i32 : i32, i32
  }
  func.func @transform_5(%arg0: i32) -> (i32, i32) {
    %c0_i32 = arith.constant 0 : i32
    %c0_i32_0 = arith.constant 0 : i32
    return %arg0, %c0_i32 : i32, i32
  }
  func.func @transform_6(%arg0: i32) -> (i32, i32) {
    %c0_i32 = arith.constant 0 : i32
    %c0_i32_0 = arith.constant 0 : i32
    return %c0_i32, %arg0 : i32, i32
  }
}

</mosaic_0001>

<bundles_post_ra>
// kernel: tpu_custom_call.1
= control target key start
LH: loop header
LB: loop body
LE: loop exit
PB: predicated region body
PF: predicated region fallthrough
CT: control target
= control target key end

     0   :  { %12 = vsyncpa [#allocation3], 0  ;;  %vm28_vm0 = vcmask 261120   ;;  %s541_s0 = inlined_call_operand.vmem [shape: f32[16,32], index: 0, kind: input, shape index: {}]   ;;  %s542_s1 = inlined_call_operand.vmem [shape: f32[32,64], index: 1, kind: input, shape index: {}]   ;;  %s543_s2 = inlined_call_operand.vmem [shape: f32[64,4], index: 2, kind: input, shape index: {}]   ;;  %s544_s3 = inlined_call_operand.vmem [shape: f32[4,64], index: 3, kind: input, shape index: {}]   ;;  %s545_s4 = inlined_call_operand.hbm [shape: bf16[16,64], index: 4, kind: output, shape index: {0}]   ;;  %s546_s5 = inlined_call_operand.vmem [shape: f32[16,4], index: 5, kind: output, shape index: {1}]   ;;  %s547_s6 = inlined_call_operand.hbm [shape: f32[4,16], index: 6, kind: output, shape index: {2}]  }
   0x1   :  { %v27_v0 = vld [vmem:[%s542_s1 + $0x18] sm:$0xff]  ;;  %v26_v1 = vld [vmem:[%s542_s1 + $0x10] sm:$0xff]  ;;  %v22_v2 = vld [vmem:[%s541_s0] sm:$0xff] }
   0x2   :  { %354 = vmatprep.subr.mxu0 %v27_v0  ;;  %v25_v3 = vld [vmem:[%s542_s1 + $0x8] sm:$0xff]  ;;  %362 = vmatprep.mubr.msk.f32.mxu0 %vm28_vm0, %v22_v2  ;;  %v128_v4 = vld [vmem:[%s543_s2 + $0x38] sm:$0xff]  ;;  %v127_v5 = vld [vmem:[%s543_s2 + $0x30] sm:$0xff] }
   0x3   :  { %355 = vmatpush3.msra.mxu0 %v27_v0  ;;  %365 = vmatprep.subr.mxu1 %v128_v4  ;;  %v24_v6 = vld [vmem:[%s542_s1] sm:$0xff]  ;;  %v126_v7 = vld [vmem:[%s543_s2 + $0x28] sm:$0xff] }
   0x4   :  { %356 = vmatprep.subr.mxu0 %v26_v1  ;;  %366 = vmatpush3.msra.mxu1 %v128_v4 }
   0x5   :  { %357 = vmatpush3.msra.mxu0 %v26_v1 }
   0x6   :  { %13 = vsyncpa [#allocation5], 0  ;;  %358 = vmatprep.subr.mxu0 %v25_v3  ;;  %367 = vmatprep.subr.mxu1 %v127_v5  ;;  %v23_v8 = vld [vmem:[%s541_s0 + $0x8] sm:$0xff]  ;;  %v125_v9 = vld [vmem:[%s543_s2 + $0x20] sm:$0xff]  ;;  %v441_v13 = vmov 0.0   ;;  %vm442_vm1 = vmmov 0  }
   0x7   :  { %359 = vmatpush3.msra.mxu0 %v25_v3  ;;  %368 = vmatpush3.msra.mxu1 %v127_v5  ;;  %v124_v10 = vld [vmem:[%s543_s2 + $0x18] sm:$0xff]  ;;  %v123_v11 = vld [vmem:[%s543_s2 + $0x10] sm:$0xff]  ;;  %v122_v12 = vld [vmem:[%s543_s2 + $0x8] sm:$0xff]  ;;  %vm129_vm2 = vcmask 523264   ;;  %vm118_vm3 = vcmask 519168  }
   0x8   :  { %360 = vmatprep.subr.mxu0 %v24_v6  ;;  %369 = vmatprep.subr.mxu1 %v126_v7  ;;  %v121_v14 = vld [vmem:[%s543_s2] sm:$0xff]  ;;  %s443_s2 = smov [#allocation2]  }
   0x9   :  { %361 = vmatpush3.msra.mxu0 %v24_v6  ;;  %370 = vmatpush3.msra.mxu1 %v126_v7  ;;  %v214_v19 = vld [vmem:[%s544_s3] sm:$0xf]  ;;  %s295_s25 = sshll.u32 %s443_s2, 4  ;;  %s296_s25 = int_to_ptr.vmem [resolvable:$true] %s295_s25 }
   0xa   :  { %363 = vmatmul.mubr.msk.f32.vlgmr.msra.gmra.mxu0 %vm28_vm0, %v23_v8  ;;  %371 = vmatprep.subr.mxu1 %v125_v9  ;;  %s397_s26 = scalar_lea.vmem %s296_s25, 128  ;;  %p402_p1 = scmp.lt.s32.totalorder %s296_s25, %s296_s25 }
   0xb   :  { %372 = vmatpush3.msra.mxu1 %v125_v9  ;;  %384 = vmatprep.subr.mxu0 %v441_v13  ;;  %p398_p0 = scmp.ne.s32.totalorder %s296_s25, %s397_s26  ;;  %p403_p2 = scmp.lt.s32.totalorder %s397_s26, %s397_s26 }
   0xc   :  { %373 = vmatprep.subr.mxu1 %v124_v10  ;;  %388 = vmatprep.mubr.msk.f32.mxu0 %vm442_vm1, %v441_v13 }
   0xd   :  { %374 = vmatpush3.msra.mxu1 %v124_v10  ;;  %p404_p3 = por %p403_p2, %p402_p1 }
   0xe   :  { %375 = vmatprep.subr.mxu1 %v123_v11 }
   0xf   :  { %376 = vmatpush3.msra.mxu1 %v123_v11  ;;  %p405_p4 = pnand %p404_p3, %p398_p0 }
  0x10   :  { %377 = vmatprep.subr.mxu1 %v122_v12 }
  0x11   :  { %378 = vmatpush3.msra.mxu1 %v122_v12 }
  0x12   :  { %379 = vmatprep.subr.mxu1 %v121_v14 }
  0x13   :  { %380 = vmatpush3.msra.mxu1 %v121_v14 }
  0xca   :  { %v364_v15 = vpop.f32.mrf.mxu0 }
  0xcb   :  { %v334_v16 = vpack.c.bf16 %v364_v15, %v364_v15  ;;  %385 = vmatpush3.xpose.msk.msra.mxu0 %vm129_vm2, %v364_v15 }
  0xcc   :  { %v101_v17 = vpop.f32.mrf.mxu0  ;;  %386 = vmatprep.subr.mxu0 %v441_v13 }
  0xcd   :  { %120 = vst.msk [vmem:[#allocation2 + $0x4] sm:$0xf] %vm118_vm3, %v334_v16  ;;  %v333_v18 = vpack.c.bf16 %v101_v17, %v101_v17  ;;  %381 = vmatprep.mubr.msk.f32.mxu1 %vm129_vm2, %v101_v17 }
  0xce   :  { %382 = vmatmul.mubr.msk.f32.vlgmr.msra.gmra.mxu1 %vm129_vm2, %v364_v15 }
  0xcf   :  { %119 = vst.msk [vmem:[#allocation2] sm:$0xf] %vm118_vm3, %v333_v18  ;;  %387 = vmatpush3.xpose.msk.msra.mxu0 %vm129_vm2, %v101_v17 }
  0xd2   :  { %389 = vmatmul.mubr.msk.f32.vlgmr.msra.gmra.mxu0 %vm129_vm2, %v214_v19 }
  0xd3   :  { %408 = shalt.err (!%p405_p4)
}
  0xd4   :  { %s444_s27 = smov 64   ;;  %s445_s28 = smov 4   ;;  %vm211_vm4 = vcmask 31744   ;;  %vm288_vm5 = vcmask 125952  }
  0xd5   :  { %301 = dma.vmem_to_hbm [thread:$0]  %s296_s25, 128, %s545_s4, [#allocation3], %s444_s27, %s444_s27, %s445_s28  }
  0xd6   :  { %s446_s3 = smov [#allocation4]  }
  0xd7   :  { %s310_s7 = sshll.u32 %s446_s3, 4  ;;  %s311_s7 = int_to_ptr.vmem [resolvable:$true] %s310_s7 }
  0xd8   :  { %s417_s12 = scalar_lea.vmem %s311_s7, 64  ;;  %p422_p6 = scmp.lt.s32.totalorder %s311_s7, %s311_s7 }
  0xd9   :  { %p418_p5 = scmp.ne.s32.totalorder %s311_s7, %s417_s12  ;;  %p423_p7 = scmp.lt.s32.totalorder %s417_s12, %s417_s12 }
  0xdb   :  { %p424_p8 = por %p423_p7, %p422_p6 }
  0xdd   :  { %p425_p9 = pnand %p424_p8, %p418_p5 }
 0x18e   :  { %v383_v20 = vpop.f32.mrf.mxu1 }
 0x18f   :  { %213 = vst.msk [vmem:[%s546_s5 + $0x8] sm:$0xff] %vm211_vm4, %v383_v20 }
 0x190   :  { %v202_v21 = vpop.f32.mrf.mxu1 }
 0x191   :  { %212 = vst.msk [vmem:[%s546_s5] sm:$0xff] %vm211_vm4, %v202_v21 }
 0x192   :  { %v284_v22 = vpop.f32.mrf.mxu0 }
 0x193   :  { %289 = vst.msk [vmem:[#allocation4] sm:$0xf] %vm288_vm5, %v284_v22 }
 0x194   :  { %v390_v23 = vpop.f32.mrf.mxu0 }
 0x195   :  { %428 = shalt.err (!%p425_p9)
}
 0x196   :  { %313 = dma.vmem_to_hbm [thread:$0]  %s311_s7, 64, %s547_s6, [#allocation5]  }
 0x197   :  { %437 = dma.done.wait [#allocation3], 128  }
 0x198   :  { %438 = vsyncadd [#allocation3], 4294967168 }
 0x199   :  { %439 = dma.done.wait [#allocation5], 64  }
 0x19a   :  { %440 = vsyncadd [#allocation5], 4294967232 }
 0x19b   :  { %322 = vsyncpa [#allocation3], 1 }
 0x19c   :  { %323 = vsyncpa [#allocation5], 1 }

</bundles_post_ra>
